<compile_context>
chip_gen: v6e
topology: v6e:2x2x1
jax: 0.10.0
libtpu: 0.0.40
codegen_flags: <defaults>
</compile_context>

<pallas_src>
import functools

import jax
import jax.numpy as jnp
from jax.experimental import pallas as pl
from jax.experimental.pallas import tpu as pltpu

_BN_EPS = 1e-5
_LANE = 128
_ROW_ALIGN = 16  # bf16 sublane tile; also valid for f32


def _round_up(x, m):
    return ((x + m - 1) // m) * m


def hidden_init_kernel(x_ref, w1_ref, w2_ref, gamma_ref, beta_ref, b2_ref,
                       o_ref, stat0_ref, stat1_ref, *, inv_n):
    """Grid = (sweep, batch_tile).

    sweep 0: accumulate per-feature sum / sum-of-squares of h = x @ w1.
    sweep 1: hn = h * scale + shift; out = relu(hn) @ w2 + b2.
    stat0/stat1 hold (sum, sumsq) during sweep 0 and (scale, shift) afterwards.
    """
    s = pl.program_id(0)
    i = pl.program_id(1)
    last = pl.num_programs(1) - 1

    # fc1 on the MXU; f32 accumulation regardless of input dtype.
    # The fc1 bias is intentionally omitted: BN's mean subtraction cancels it.
    h = jnp.dot(x_ref[...], w1_ref[...], preferred_element_type=jnp.float32)

    @pl.when(jnp.logical_and(s == 0, i == 0))
    def _init_stats():
        stat0_ref[...] = jnp.zeros_like(stat0_ref)
        stat1_ref[...] = jnp.zeros_like(stat1_ref)

    @pl.when(s == 0)
    def _accumulate():
        stat0_ref[...] += jnp.sum(h, axis=0, keepdims=True)
        stat1_ref[...] += jnp.sum(h * h, axis=0, keepdims=True)

    @pl.when(jnp.logical_and(s == 0, i == last))
    def _fold_bn():
        mean = stat0_ref[...] * inv_n
        var = jnp.maximum(stat1_ref[...] * inv_n - mean * mean, 0.0)
        inv_std = jax.lax.rsqrt(var + _BN_EPS)     # EUP slot, effectively free
        scale = gamma_ref[...] * inv_std
        stat0_ref[...] = scale
        stat1_ref[...] = beta_ref[...] - mean * scale

    @pl.when(s == 1)
    def _apply():
        hn = h * stat0_ref[...] + stat1_ref[...]   # fused BN scale/shift
        hr = jnp.maximum(hn, 0.0)                  # ReLU
        out = jnp.dot(hr.astype(w2_ref.dtype), w2_ref[...],
                      preferred_element_type=jnp.float32) + b2_ref[...]
        o_ref[...] = out.astype(o_ref.dtype)


def _pick_tile_n(n_rows, e_p, h1_p, h2_p, x_bytes,
                 budget_bytes=24 * 1024 * 1024):
    # Resident (constant index_map) weights may still be double-buffered.
    fixed = 2 * (e_p * h1_p + h1_p * h2_p) * x_bytes + 16 * (h1_p + h2_p) * 4
    # Double-buffered x / out tiles + f32 intermediates per row.
    per_row = 2 * e_p * x_bytes + 2 * h2_p * 4 + 2 * h1_p * 4
    tile = max(_ROW_ALIGN, (budget_bytes - fixed) // per_row)
    tile = min(int(tile), 512, _round_up(n_rows, _ROW_ALIGN))
    return max(_ROW_ALIGN, (tile // _ROW_ALIGN) * _ROW_ALIGN)


def hidden_init_fn(node_emb, params, *, tile_n=None,
                   compute_dtype=jnp.float32):
    """node_emb: (N, emb_dim) float32. params: see make_params.

    compute_dtype: dtype fed to the MXU for x / w1 / w2 (use jnp.bfloat16 on
    v6e/v7x for ~2x on the memory-bound path); accumulation and all BN /
    elementwise math stay f32.
    """
    n, emb_dim = node_emb.shape
    half = params["w1"].shape[1]
    hid_dim = params["w2"].shape[1]

    # Lane-dense padding: every feature dim a multiple of 128.
    e_p = _round_up(emb_dim, _LANE)
    h1_p = _round_up(half, _LANE)
    h2_p = _round_up(hid_dim, _LANE)

    x_bytes = jnp.dtype(compute_dtype).itemsize
    if tile_n is None:
        tile_n = _pick_tile_n(n, e_p, h1_p, h2_p, x_bytes)
    assert tile_n % _ROW_ALIGN == 0

    n_p = _round_up(max(n, tile_n), tile_n)
    num_tiles = n_p // tile_n

    # Zero padding keeps the BN statistics exact: padded rows/columns of
    # h = x @ w1 are exactly zero (no fc1 bias), so dividing the accumulated
    # sums by the true N needs no masking.
    x = jnp.pad(node_emb, ((0, n_p - n), (0, e_p - emb_dim))).astype(compute_dtype)
    w1 = jnp.pad(params["w1"], ((0, e_p - emb_dim), (0, h1_p - half))).astype(compute_dtype)
    w2 = jnp.pad(params["w2"], ((0, h1_p - half), (0, h2_p - hid_dim))).astype(compute_dtype)
    gamma = jnp.pad(params["gamma"], ((0, 0), (0, h1_p - half))).astype(jnp.float32)
    beta = jnp.pad(params["beta"], ((0, 0), (0, h1_p - half))).astype(jnp.float32)
    b2 = jnp.pad(params["b2"], ((0, 0), (0, h2_p - hid_dim))).astype(jnp.float32)
    # params["b1"] is deliberately NOT passed: BN mean-subtraction cancels it.

    kernel = functools.partial(hidden_init_kernel, inv_n=1.0 / n)

    out_padded = pl.pallas_call(
        kernel,
        out_shape=jax.ShapeDtypeStruct((n_p, h2_p), jnp.float32),
        grid=(2, num_tiles),
        in_specs=[
            pl.BlockSpec((tile_n, e_p), lambda s, i: (i, 0)),   # x (batch tile)
            pl.BlockSpec((e_p, h1_p), lambda s, i: (0, 0)),     # w1 (resident)
            pl.BlockSpec((h1_p, h2_p), lambda s, i: (0, 0)),    # w2 (resident)
            pl.BlockSpec((1, h1_p), lambda s, i: (0, 0)),       # gamma
            pl.BlockSpec((1, h1_p), lambda s, i: (0, 0)),       # beta
            pl.BlockSpec((1, h2_p), lambda s, i: (0, 0)),       # b2
        ],
        # i * s keeps the output block resident (and unflushed) during the
        # stats sweep; only sweep-1 data ever reaches HBM.
        out_specs=pl.BlockSpec((tile_n, h2_p), lambda s, i: (i * s, 0)),
        scratch_shapes=[
            pltpu.VMEM((1, h1_p), jnp.float32),  # sum   -> scale
            pltpu.VMEM((1, h1_p), jnp.float32),  # sumsq -> shift
        ],
        compiler_params=pltpu.CompilerParams(
            # Both axes carry the cross-tile BN-stats dependency -> arbitrary.
            dimension_semantics=("arbitrary", "arbitrary"),
            vmem_limit_bytes=32 * 1024 * 1024,
        ),
    )(x, w1, w2, gamma, beta, b2)

    return out_padded[:n, :hid_dim]


def make_params(key, emb_dim, hid_dim):
    half = emb_dim // 2
    k1, k2, k3, k4 = jax.random.split(key, 4)
    lim1 = 1.0 / jnp.sqrt(emb_dim)
    lim2 = 1.0 / jnp.sqrt(half)
    return {
        "w1": jax.random.uniform(k1, (emb_dim, half), jnp.float32, -lim1, lim1),
        "b1": jax.random.uniform(k2, (1, half), jnp.float32, -lim1, lim1),
        "gamma": jnp.ones((1, half), jnp.float32),   # BatchNorm1d default weight
        "beta": jnp.zeros((1, half), jnp.float32),   # BatchNorm1d default bias
        "w2": jax.random.uniform(k3, (half, hid_dim), jnp.float32, -lim2, lim2),
        "b2": jax.random.uniform(k4, (1, hid_dim), jnp.float32, -lim2, lim2),
    }


def reference(node_emb, params):
    h = node_emb @ params["w1"] + params["b1"]
    mean = h.mean(axis=0, keepdims=True)
    var = ((h - mean) ** 2).mean(axis=0, keepdims=True)
    hn = (h - mean) / jnp.sqrt(var + _BN_EPS) * params["gamma"] + params["beta"]
    hr = jnp.maximum(hn, 0.0)
    return hr @ params["w2"] + params["b2"]


if __name__ == "__main__":
    key = jax.random.PRNGKey(0)
    k_in, k_p = jax.random.split(key)

    # Small shapes consistent with the module; batch not a multiple of the
    # tile to exercise the zero-padded / multi-tile stats path.
    batch, emb_dim, hid_dim = 20, 32, 32
    node_emb = jax.random.normal(k_in, (batch, emb_dim), jnp.float32)
    params = make_params(k_p, emb_dim, hid_dim)

    ref = reference(node_emb, params)

    # f32 path: strict check against the reference.
    out = jax.block_until_ready(hidden_init_fn(node_emb, params, tile_n=16))
    assert out.shape == (batch, hid_dim)
    assert jnp.allclose(out, ref, atol=1e-4, rtol=1e-4), float(
        jnp.max(jnp.abs(out - ref)))

    # bf16-MXU path (v6e/v7x optimization): loose check, within bf16 noise.
    out_bf16 = jax.block_until_ready(
        hidden_init_fn(node_emb, params, tile_n=16,
                       compute_dtype=jnp.bfloat16))
    assert out_bf16.shape == (batch, hid_dim)
    assert jnp.allclose(out_bf16, ref, atol=1e-1, rtol=1e-1)

    print("KERNEL_OK")
</pallas_src>

<mosaic_0001>
module attributes {stable_mosaic.version = 11 : i64} {
  func.func @hidden_init_kernel(%arg0: i32, %arg1: i32, %arg2: memref<16x128xf32, #tpu.memory_space<vmem>>, %arg3: memref<128x128xf32, #tpu.memory_space<vmem>>, %arg4: memref<128x128xf32, #tpu.memory_space<vmem>>, %arg5: memref<1x128xf32, #tpu.memory_space<vmem>>, %arg6: memref<1x128xf32, #tpu.memory_space<vmem>>, %arg7: memref<1x128xf32, #tpu.memory_space<vmem>>, %arg8: memref<16x128xf32, #tpu.memory_space<vmem>>, %arg9: memref<1x128xf32, #tpu.memory_space<vmem>>, %arg10: memref<1x128xf32, #tpu.memory_space<vmem>>) attributes {dimension_semantics = [#tpu.dimension_semantics<arbitrary>, #tpu.dimension_semantics<arbitrary>], iteration_bounds = array<i64: 2, 2>, scalar_prefetch = 0 : i64, scratch_operands = 2 : i64, tpu.core_type = #tpu.core_type<tc>, window_params = [{transform_indices = @transform_0, window_bounds = array<i64: 16, 128>}, {pipeline_mode = #tpu.pipeline_mode<synchronous>, transform_indices = @transform_1, window_bounds = array<i64: 128, 128>}, {pipeline_mode = #tpu.pipeline_mode<synchronous>, transform_indices = @transform_2, window_bounds = array<i64: 128, 128>}, {pipeline_mode = #tpu.pipeline_mode<synchronous>, transform_indices = @transform_3, window_bounds = array<i64: 1, 128>}, {pipeline_mode = #tpu.pipeline_mode<synchronous>, transform_indices = @transform_4, window_bounds = array<i64: 1, 128>}, {pipeline_mode = #tpu.pipeline_mode<synchronous>, transform_indices = @transform_5, window_bounds = array<i64: 1, 128>}, {transform_indices = @transform_6, window_bounds = array<i64: 16, 128>}]} {
    %c0 = arith.constant 0 : index
    %c0_0 = arith.constant 0 : index
    %0 = vector.load %arg2[%c0, %c0_0] : memref<16x128xf32, #tpu.memory_space<vmem>>, vector<16x128xf32>
    %c0_1 = arith.constant 0 : index
    %c0_2 = arith.constant 0 : index
    %1 = vector.load %arg3[%c0_1, %c0_2] : memref<128x128xf32, #tpu.memory_space<vmem>>, vector<128x128xf32>
    %cst = arith.constant dense<0.000000e+00> : vector<16x128xf32>
    %2 = tpu.matmul %0, %1, %cst {dimension_numbers = #tpu.dot_dimension_numbers<[1], [0], [0], [1], [0, 0, 1, 1], [], []>} : vector<16x128xf32>, vector<128x128xf32>, vector<16x128xf32> -> vector<16x128xf32>
    %c0_i32 = arith.constant 0 : i32
    %3 = arith.cmpi eq, %arg0, %c0_i32 : i32
    %c0_i32_3 = arith.constant 0 : i32
    %4 = arith.cmpi eq, %arg1, %c0_i32_3 : i32
    %5 = arith.andi %3, %4 : i1
    %6 = arith.extui %5 : i1 to i32
    %c0_i32_4 = arith.constant 0 : i32
    %7 = arith.cmpi ne, %6, %c0_i32_4 : i32
    scf.if %7 {
      %cst_11 = arith.constant 0.000000e+00 : f32
      %19 = vector.broadcast %cst_11 : f32 to vector<1x128xf32>
      %c0_12 = arith.constant 0 : index
      %c0_13 = arith.constant 0 : index
      %20 = vector.load %arg9[%c0_12, %c0_13] : memref<1x128xf32, #tpu.memory_space<vmem>>, vector<1x128xf32>
      tpu.vector_store %arg9[%c0_12, %c0_13], %19 {strides = array<i32>} : memref<1x128xf32, #tpu.memory_space<vmem>>, vector<1x128xf32>,
      %cst_14 = arith.constant 0.000000e+00 : f32
      %21 = vector.broadcast %cst_14 : f32 to vector<1x128xf32>
      %c0_15 = arith.constant 0 : index
      %c0_16 = arith.constant 0 : index
      %22 = vector.load %arg10[%c0_15, %c0_16] : memref<1x128xf32, #tpu.memory_space<vmem>>, vector<1x128xf32>
      tpu.vector_store %arg10[%c0_15, %c0_16], %21 {strides = array<i32>} : memref<1x128xf32, #tpu.memory_space<vmem>>, vector<1x128xf32>,
    } else {
    }
    %c0_i32_5 = arith.constant 0 : i32
    %8 = arith.cmpi eq, %arg0, %c0_i32_5 : i32
    %9 = arith.extui %8 : i1 to i32
    %c0_i32_6 = arith.constant 0 : i32
    %10 = arith.cmpi ne, %9, %c0_i32_6 : i32
    scf.if %10 {
      %c0_11 = arith.constant 0 : index
      %c0_12 = arith.constant 0 : index
      %19 = vector.load %arg9[%c0_11, %c0_12] : memref<1x128xf32, #tpu.memory_space<vmem>>, vector<1x128xf32>
      %cst_13 = arith.constant dense<0.000000e+00> : vector<128xf32>
      %20 = vector.multi_reduction <add>, %2, %cst_13 [0] : vector<16x128xf32> to vector<128xf32>
      %21 = vector.shape_cast %20 : vector<128xf32> to vector<1x128xf32>
      %22 = arith.addf %19, %21 : vector<1x128xf32>
      %c0_14 = arith.constant 0 : index
      %c0_15 = arith.constant 0 : index
      %23 = vector.load %arg9[%c0_14, %c0_15] : memref<1x128xf32, #tpu.memory_space<vmem>>, vector<1x128xf32>
      tpu.vector_store %arg9[%c0_14, %c0_15], %22 {strides = array<i32>} : memref<1x128xf32, #tpu.memory_space<vmem>>, vector<1x128xf32>,
      %c0_16 = arith.constant 0 : index
      %c0_17 = arith.constant 0 : index
      %24 = vector.load %arg10[%c0_16, %c0_17] : memref<1x128xf32, #tpu.memory_space<vmem>>, vector<1x128xf32>
      %25 = arith.mulf %2, %2 : vector<16x128xf32>
      %cst_18 = arith.constant dense<0.000000e+00> : vector<128xf32>
      %26 = vector.multi_reduction <add>, %25, %cst_18 [0] : vector<16x128xf32> to vector<128xf32>
      %27 = vector.shape_cast %26 : vector<128xf32> to vector<1x128xf32>
      %28 = arith.addf %24, %27 : vector<1x128xf32>
      %c0_19 = arith.constant 0 : index
      %c0_20 = arith.constant 0 : index
      %29 = vector.load %arg10[%c0_19, %c0_20] : memref<1x128xf32, #tpu.memory_space<vmem>>, vector<1x128xf32>
      tpu.vector_store %arg10[%c0_19, %c0_20], %28 {strides = array<i32>} : memref<1x128xf32, #tpu.memory_space<vmem>>, vector<1x128xf32>,
    } else {
    }
    %c0_i32_7 = arith.constant 0 : i32
    %11 = arith.cmpi eq, %arg0, %c0_i32_7 : i32
    %c1_i32 = arith.constant 1 : i32
    %12 = arith.cmpi eq, %arg1, %c1_i32 : i32
    %13 = arith.andi %11, %12 : i1
    %14 = arith.extui %13 : i1 to i32
    %c0_i32_8 = arith.constant 0 : i32
    %15 = arith.cmpi ne, %14, %c0_i32_8 : i32
    scf.if %15 {
      %c0_11 = arith.constant 0 : index
      %c0_12 = arith.constant 0 : index
      %19 = vector.load %arg9[%c0_11, %c0_12] : memref<1x128xf32, #tpu.memory_space<vmem>>, vector<1x128xf32>
      %cst_13 = arith.constant 5.000000e-02 : f32
      %20 = vector.broadcast %cst_13 : f32 to vector<1x128xf32>
      %21 = arith.mulf %19, %20 : vector<1x128xf32>
      %c0_14 = arith.constant 0 : index
      %c0_15 = arith.constant 0 : index
      %22 = vector.load %arg10[%c0_14, %c0_15] : memref<1x128xf32, #tpu.memory_space<vmem>>, vector<1x128xf32>
      %cst_16 = arith.constant 5.000000e-02 : f32
      %23 = vector.broadcast %cst_16 : f32 to vector<1x128xf32>
      %24 = arith.mulf %22, %23 : vector<1x128xf32>
      %25 = arith.mulf %21, %21 : vector<1x128xf32>
      %26 = arith.subf %24, %25 : vector<1x128xf32>
      %cst_17 = arith.constant 0.000000e+00 : f32
      %27 = vector.broadcast %cst_17 : f32 to vector<1x128xf32>
      %28 = arith.maximumf %26, %27 : vector<1x128xf32>
      %cst_18 = arith.constant 9.99999974E-6 : f32
      %29 = vector.broadcast %cst_18 : f32 to vector<1x128xf32>
      %30 = arith.addf %28, %29 : vector<1x128xf32>
      %31 = math.rsqrt %30 : vector<1x128xf32>
      %c0_19 = arith.constant 0 : index
      %c0_20 = arith.constant 0 : index
      %32 = vector.load %arg5[%c0_19, %c0_20] : memref<1x128xf32, #tpu.memory_space<vmem>>, vector<1x128xf32>
      %33 = arith.mulf %32, %31 : vector<1x128xf32>
      %c0_21 = arith.constant 0 : index
      %c0_22 = arith.constant 0 : index
      %34 = vector.load %arg9[%c0_21, %c0_22] : memref<1x128xf32, #tpu.memory_space<vmem>>, vector<1x128xf32>
      tpu.vector_store %arg9[%c0_21, %c0_22], %33 {strides = array<i32>} : memref<1x128xf32, #tpu.memory_space<vmem>>, vector<1x128xf32>,
      %c0_23 = arith.constant 0 : index
      %c0_24 = arith.constant 0 : index
      %35 = vector.load %arg6[%c0_23, %c0_24] : memref<1x128xf32, #tpu.memory_space<vmem>>, vector<1x128xf32>
      %36 = arith.mulf %21, %33 : vector<1x128xf32>
      %37 = arith.subf %35, %36 : vector<1x128xf32>
      %c0_25 = arith.constant 0 : index
      %c0_26 = arith.constant 0 : index
      %38 = vector.load %arg10[%c0_25, %c0_26] : memref<1x128xf32, #tpu.memory_space<vmem>>, vector<1x128xf32>
      tpu.vector_store %arg10[%c0_25, %c0_26], %37 {strides = array<i32>} : memref<1x128xf32, #tpu.memory_space<vmem>>, vector<1x128xf32>,
    } else {
    }
    %c1_i32_9 = arith.constant 1 : i32
    %16 = arith.cmpi eq, %arg0, %c1_i32_9 : i32
    %17 = arith.extui %16 : i1 to i32
    %c0_i32_10 = arith.constant 0 : i32
    %18 = arith.cmpi ne, %17, %c0_i32_10 : i32
    scf.if %18 {
      %c0_11 = arith.constant 0 : index
      %c0_12 = arith.constant 0 : index
      %19 = vector.load %arg9[%c0_11, %c0_12] : memref<1x128xf32, #tpu.memory_space<vmem>>, vector<1x128xf32>
      %20 = vector.broadcast %19 : vector<1x128xf32> to vector<16x128xf32>
      %21 = arith.mulf %2, %20 : vector<16x128xf32>
      %c0_13 = arith.constant 0 : index
      %c0_14 = arith.constant 0 : index
      %22 = vector.load %arg10[%c0_13, %c0_14] : memref<1x128xf32, #tpu.memory_space<vmem>>, vector<1x128xf32>
      %23 = vector.broadcast %22 : vector<1x128xf32> to vector<16x128xf32>
      %24 = arith.addf %21, %23 : vector<16x128xf32>
      %cst_15 = arith.constant 0.000000e+00 : f32
      %25 = vector.broadcast %cst_15 : f32 to vector<16x128xf32>
      %26 = arith.maximumf %24, %25 : vector<16x128xf32>
      %c0_16 = arith.constant 0 : index
      %c0_17 = arith.constant 0 : index
      %27 = vector.load %arg4[%c0_16, %c0_17] : memref<128x128xf32, #tpu.memory_space<vmem>>, vector<128x128xf32>
      %cst_18 = arith.constant dense<0.000000e+00> : vector<16x128xf32>
      %28 = tpu.matmul %26, %27, %cst_18 {dimension_numbers = #tpu.dot_dimension_numbers<[1], [0], [0], [1], [0, 0, 1, 1], [], []>} : vector<16x128xf32>, vector<128x128xf32>, vector<16x128xf32> -> vector<16x128xf32>
      %c0_19 = arith.constant 0 : index
      %c0_20 = arith.constant 0 : index
      %29 = vector.load %arg7[%c0_19, %c0_20] : memref<1x128xf32, #tpu.memory_space<vmem>>, vector<1x128xf32>
      %30 = vector.broadcast %29 : vector<1x128xf32> to vector<16x128xf32>
      %31 = arith.addf %28, %30 : vector<16x128xf32>
      %c0_21 = arith.constant 0 : index
      %c0_22 = arith.constant 0 : index
      %32 = vector.load %arg8[%c0_21, %c0_22] : memref<16x128xf32, #tpu.memory_space<vmem>>, vector<16x128xf32>
      tpu.vector_store %arg8[%c0_21, %c0_22], %31 {strides = array<i32>} : memref<16x128xf32, #tpu.memory_space<vmem>>, vector<16x128xf32>,
    } else {
    }
    return
  }
  func.func @transform_0(%arg0: i32, %arg1: i32) -> (i32, i32) {
    %c0_i32 = arith.constant 0 : i32
    %c0_i32_0 = arith.constant 0 : i32
    return %arg1, %c0_i32 : i32, i32
  }
  func.func @transform_1(%arg0: i32, %arg1: i32) -> (i32, i32) {
    %c0_i32 = arith.constant 0 : i32
    %c0_i32_0 = arith.constant 0 : i32
    %c0_i32_1 = arith.constant 0 : i32
    return %c0_i32, %c0_i32_0 : i32, i32
  }
  func.func @transform_2(%arg0: i32, %arg1: i32) -> (i32, i32) {
    %c0_i32 = arith.constant 0 : i32
    %c0_i32_0 = arith.constant 0 : i32
    %c0_i32_1 = arith.constant 0 : i32
    return %c0_i32, %c0_i32_0 : i32, i32
  }
  func.func @transform_3(%arg0: i32, %arg1: i32) -> (i32, i32) {
    %c0_i32 = arith.constant 0 : i32
    %c0_i32_0 = arith.constant 0 : i32
    %c0_i32_1 = arith.constant 0 : i32
    return %c0_i32, %c0_i32_0 : i32, i32
  }
  func.func @transform_4(%arg0: i32, %arg1: i32) -> (i32, i32) {
    %c0_i32 = arith.constant 0 : i32
    %c0_i32_0 = arith.constant 0 : i32
    %c0_i32_1 = arith.constant 0 : i32
    return %c0_i32, %c0_i32_0 : i32, i32
  }
  func.func @transform_5(%arg0: i32, %arg1: i32) -> (i32, i32) {
    %c0_i32 = arith.constant 0 : i32
    %c0_i32_0 = arith.constant 0 : i32
    %c0_i32_1 = arith.constant 0 : i32
    return %c0_i32, %c0_i32_0 : i32, i32
  }
  func.func @transform_6(%arg0: i32, %arg1: i32) -> (i32, i32) {
    %0 = arith.muli %arg1, %arg0 : i32
    %c0_i32 = arith.constant 0 : i32
    %c0_i32_0 = arith.constant 0 : i32
    return %0, %c0_i32 : i32, i32
  }
}

</mosaic_0001>

<bundles_post_ra>
// kernel: tpu_custom_call.1
= control target key start
LH: loop header
LB: loop body
LE: loop exit
PB: predicated region body
PF: predicated region fallthrough
CT: control target
= control target key end

     0   :  { %s1514_s0 = inlined_call_operand.hbm [shape: f32[32,128], index: 0, kind: input, shape index: {}]   ;;  %s1515_s1 = inlined_call_operand.hbm [shape: f32[128,128], index: 1, kind: input, shape index: {}]   ;;  %s1516_s2 = inlined_call_operand.hbm [shape: f32[128,128], index: 2, kind: input, shape index: {}]   ;;  %s1517_s3 = inlined_call_operand.vmem [shape: f32[1,128], index: 3, kind: input, shape index: {}]   ;;  %s1518_s4 = inlined_call_operand.vmem [shape: f32[1,128], index: 4, kind: input, shape index: {}]   ;;  %s1519_s5 = inlined_call_operand.vmem [shape: f32[1,128], index: 5, kind: input, shape index: {}]   ;;  %s1520_s6 = inlined_call_operand.hbm [shape: f32[32,128], index: 6, kind: output, shape index: {}]  }
   0x1   :  { %1530 = sst [smem:[#allocation18_spill]] %s1515_s1 }
   0x2   :  { %1531 = sst [smem:[#allocation19_spill]] %s1516_s2 }
   0x3   :  { %1532 = sst [smem:[#allocation20_spill]] %s1518_s4 }
   0x4   :  { %1533 = sst [smem:[#allocation21_spill]] %s1519_s5 }
   0x5   :  { %1534 = sst [smem:[#allocation22_spill]] %s1520_s6 }
   0x6   :  { %11 = vsyncpa [#allocation5], 0 }
   0x7   :  { %13 = vsyncpa [#allocation5 + $0x1], 0 }
   0x8   :  { %14 = vsyncpa [#allocation8], 0 }
   0x9   :  { %15 = vsyncpa [#allocation6], 0 }
   0xa   :  { %17 = vsyncpa [#allocation6 + $0x1], 0  ;;  %s1217_s21 = smov 0   ;;  %s1219_s22 = smov 0  }
   0xb   :  { %s1221_s23 = smov 0   ;;  %s1223_s24 = smov 0  }
   0xc   :  { %s1225_s25 = smov 0   ;;  %s1227_s26 = smov 0  }
   0xd   :  { %s1229_s27 = smov 0   ;;  %s1231_s28 = smov 0  }
   0xe   :  { %s1233_s29 = smov 0   ;;  %s1235_s30 = smov 0  }
   0xf   :  { %s1237_s7 = smov 0  }
  0x10 LB: > { %1535 = sst [smem:[#allocation14_spill]] %s1131_s21  ;;  %s705_s8 = sadd.s32 4294967295, %s1171_s7   ;;  %s1171_s7 = sphi %s1237_s7, %s23_s7   ;;  %s1167_s30 = sphi %s1235_s30, %s1569_s30   ;;  %s1163_s29 = sphi %s1233_s29, %s1568_s29   ;;  %s1159_s28 = sphi %s1231_s28, %s1560_s28   ;;  %s1155_s27 = sphi %s1229_s27, %s1567_s27   ;;  %s1151_s26 = sphi %s1227_s26, %s1566_s26   ;;  %s1147_s25 = sphi %s1225_s25, %s1565_s25   ;;  %s1143_s24 = sphi %s1223_s24, %s1564_s24   ;;  %s1139_s23 = sphi %s1221_s23, %s1563_s23   ;;  %s1135_s22 = sphi %s1219_s22, %s1562_s22   ;;  %s1131_s21 = sphi %s1217_s21, %s1561_s21  }
  0x11   : > { %1536 = sst [smem:[#allocation15_spill]] %s1167_s30  ;;  %s706_s9 = sadd.s32 4294967294, %s1171_s7  }
  0x12   : > { %p55_p0 = scmp.ne.s32.totalorder %s1147_s25, %s1143_s24  ;;  %p1273_p1 = scmp.eq.s32.totalorder %s705_s8, 0 }
  0x13   : > { %p185_p2 = scmp.ne.s32.totalorder %s1139_s23, %s1135_s22  ;;  %p186_p4 = scmp.eq.s32.totalorder %s705_s8, 3 }
  0x14   : > { %p1282_p3 = por %p1273_p1, %p55_p0  ;;  %p191_p5 = scmp.ne.s32.totalorder %s1135_s22, %s1131_s21 }
  0x15   : > { %p192_p6 = scmp.eq.s32.totalorder %s706_s9, 3  ;;  %p1288_p7 = por %p186_p4, %p185_p2 }
  0x16   : > { %p707_p8 = scmp.ge.s32.totalorder %s1171_s7, 1  ;;  %p199_p10 = scmp.lt.s32.totalorder %s1171_s7, 5 }
  0x17   : > { %s1539_s13 = scalar_select %p1288_p7, 1, 0 }
  0x18   : > { %p1293_p9 = por %p192_p6, %p191_p5  ;;  %p1298_p11 = pnand %p707_p8, %p199_p10 }
  0x19   : > { %1540 = sst [smem:[#allocation16_spill]] %s1539_s13  ;;  %s1173_s16 = smov [#allocation7]  }
  0x1a   : > { %s1541_s14 = scalar_select %p1293_p9, 1, 0 }
  0x1b   : > { %s211_s17 = sshll.u32 %s1173_s16, 4  ;;  %p849_p12 = pneg %p1298_p11  ;;  %s212_s17 = int_to_ptr.vmem [resolvable:$true] %s211_s17 }
  0x1c   : > { %1542 = sst [smem:[#allocation17_spill]] %s1541_s14  ;;  %s1174_s19 = smov [#allocation9]  }
  0x1d   : > { %p1306_p13 = pnand %p849_p12, %p1273_p1  ;;  %s224_s20 = sshll.u32 %s1174_s19, 4  ;;  %s225_s20 = int_to_ptr.vmem [resolvable:$true] %s224_s20 }
  0x1e   : > { %s978_s24 = scalar_lea.vmem %s212_s17, 2048  ;;  %p986_p6 = scmp.lt.s32.totalorder %s212_s17, %s212_s17 }
  0x1f   : > { %p969_p0 = pneg %p1306_p13  ;;  %p979_p2 = scmp.ne.s32.totalorder %s212_s17, %s978_s24 }
  0x20   : > { %p987_p8 = scmp.lt.s32.totalorder %s978_s24, %s978_s24 }
  0x21   : > { %p981_p4 = pnand %p979_p2, %p969_p0 }
  0x22   : > { %p988_p10 = por %p987_p8, %p986_p6 }
  0x23   : > { %p982_p5 = pneg %p981_p4 }
  0x25   : > { %p989_p12 = pnand %p988_p10, %p982_p5 }
  0x27   : > { %992 = shalt.err (!%p989_p12)
}
  0x28   : > { %s1522_s8 = smov 128   ;;  %s1523_s9 = smov 8  }
  0x29   : > { %s1545_s1 = sld [smem:[#allocation18_spill]]  ;;  %s1004_s11 = scalar_lea.vmem %s225_s20, 2048 }
  0x2a   : > { %p1005_p2 = scmp.ne.s32.totalorder %s225_s20, %s1004_s11  ;;  %p1012_p5 = scmp.lt.s32.totalorder %s225_s20, %s225_s20 }
  0x2b   : > { %p1013_p8 = scmp.lt.s32.totalorder %s1004_s11, %s1004_s11 }
  0x2c   : > { %p1007_p4 = pnand %p1005_p2, %p969_p0 }
  0x2d   : > { %p1014_p10 = por %p1013_p8, %p1012_p5 }
  0x2e   : > { %p1008_p6 = pneg %p1007_p4 }
  0x2f   : > { %852 = dma.hbm_to_vmem [thread:$0]  (!%p1306_p13), %s1545_s1, 2048, %s212_s17, [#allocation8], %s1522_s8, %s1522_s8, %s1523_s9  }
  0x30   : > { %p1015_p12 = pnand %p1014_p10, %p1008_p6 }
  0x32   : > { %1018 = shalt.err (!%p1015_p12)
}
  0x33   : > { %s1546_s2 = sld [smem:[#allocation19_spill]]  ;;  %s32_s11 = sadd.s32 1, %s1163_s29 }
  0x34   : > { %s35_s17 = sadd.s32 1, %s1167_s30  ;;  %p33_p0 = scmp.ge.s32.totalorder %s32_s11, 2 }
  0x35   : > { %s42_s18 = sadd.s32 1, %s1151_s26  ;;  %p49_p2 = scmp.ne.s32.totalorder %s1151_s26, %s1147_s25 }
  0x36   : > { %p50_p4 = scmp.eq.s32.totalorder %s1171_s7, 0  ;;  %s1571_s11 = smov (%p33_p0, %s32_s11), 0 }
  0x37   : > { %s1573_s17 = smov (!%p33_p0, %s35_s17), %s1167_s30  ;;  %s39_s14 = ssub.s32 %s1163_s29, %s1571_s11 }
  0x38   : > { %p1345_p6 = por %p50_p4, %p49_p2  ;;  %p40_p5 = scmp.eq.s32.totalorder %s39_s14, 0 }
  0x39   : > { %855 = dma.hbm_to_vmem [thread:$0]  (!%p1306_p13), %s1546_s2, 2048, %s225_s20, [#allocation8], %s1522_s8, %s1522_s8, %s1523_s9  }
  0x3a   : > { %p37_p13 = scmp.ge.s32.totalorder %s1573_s17, 2  ;;  %s170_s20 = smul.u32 %s1163_s29, %s1167_s30 }
  0x3b   : > { %p866_p8 = scmp.lt.s32.totalorder %s1171_s7, 4  ;;  %s247_s8 = sand.u32 1, %s1151_s26  }
  0x3c   : > { %s1575_s17 = smov (%p37_p13, %s1573_s17), 0  ;;  %s711_s9 = sshll.u32 %s247_s8, 4 }
  0x3d   : > { %s1355_s19 = scalar_select %p40_p5, %s1151_s26, %s42_s18  }
  0x3e   : > { %s171_s24 = smul.u32 %s1575_s17, %s1571_s11  ;;  %s729_s2 = sshll.u32 %s1163_s29, 8 }
  0x3f   : > { %s257_s13 = scalar_lea.hbm %s1514_s0, %s729_s2  ;;  %s251_s14 = scalar_lea.vmem [#allocation4], %s711_s9 }
  0x40   : > { %s172_s1 = ssub.s32 %s170_s20, %s171_s24  ;;  %s258_s5 = sshll.u32 %s251_s14, 4  ;;  %s259_s5 = int_to_ptr.vmem [resolvable:$true] %s258_s5 }
  0x41   : > { %p173_p10 = scmp.eq.s32.totalorder %s172_s1, 0  ;;  %s1548_s4 = sadd.s32 1, %s1139_s23 }
  0x42   : > { %p1373_p12 = pnand %p866_p8, %p1345_p6  ;;  %s248_s20 = scalar_lea.sflag [#allocation5], %s247_s8 }
  0x43   : > { %s1367_s30 = scalar_select %p173_p10, %s1139_s23, %s1548_s4  }
  0x44   : > { %p1021_p0 = pneg %p1373_p12  ;;  %s1032_s1 = scalar_lea.vmem %s259_s5, 256 }
  0x45   : > { %p1033_p2 = scmp.ne.s32.totalorder %s259_s5, %s1032_s1  ;;  %s1177_s2 = smov [#allocation4]  }
  0x46   : > { %s1037_s6 = sshll.u32 %s1177_s2, 4  ;;  %s1038_s6 = int_to_ptr.vmem [resolvable:$false] %s1037_s6 }
  0x47   : > { %p1035_p4 = pnand %p1033_p2, %p1021_p0  ;;  %s1039_s4 = scalar_lea.vmem %s1038_s6, 512 }
  0x48   : > { %p1040_p5 = scmp.lt.s32.totalorder %s259_s5, %s1038_s6  ;;  %p1041_p10 = scmp.lt.s32.totalorder %s1039_s4, %s1032_s1 }
  0x49   : > { %p1036_p13 = pneg %p1035_p4 }
  0x4a   : > { %p1042_p9 = por %p1041_p10, %p1040_p5 }
  0x4c   : > { %p1043_p7 = pnand %p1042_p9, %p1036_p13 }
  0x4e   : > { %1046 = shalt.err (!%p1043_p7)
}
  0x4f   : > { %s1550_s21 = smov 8   ;;  %s1551_s9 = smov 128  }
  0x50   : > { %859 = dma.hbm_to_vmem [thread:$0]  (!%p1373_p12), %s257_s13, 256, %s259_s5, %s248_s20, %s1551_s9, %s1551_s9, %s1550_s21  }
  0x51   : > { %270 = sbr.rel (%p1298_p11) target bundleno = 651 (0x28b), region = 44  ;;  %s272_s8 = sand.u32 (!%p1298_p11), 1, %s1147_s25  }
  0x52   : > { %s1387_s16 = sshll.u32 (!%p1298_p11), %s272_s8, 4  ;;  %s273_s24 = scalar_lea.sflag (!%p1298_p11), [#allocation5], %s272_s8 }
  0x53   : > { %s276_s14 = scalar_lea.vmem (!%p1298_p11), [#allocation4], %s1387_s16 }
  0x56   : > { %1118 = dma.done.wait (%p1282_p3), %s273_s24, 256  }
  0x57   : > { %1120 = vsyncadd (%p1282_p3), %s273_s24, 4294967040 }
  0x58   : > { %1122 = dma.done.wait (%p1273_p1), [#allocation8], 4096  }
  0x59   : > { %1124 = vsyncadd (%p1273_p1), [#allocation8], 4294963200  ;;  %s310_s5 = sand.u32 1, %s1135_s22   ;;  %v333_v0 = vld [vmem:[#allocation7 + $0x78] sm:$0xff]  ;;  %v332_v1 = vld [vmem:[#allocation7 + $0x70] sm:$0xff]  ;;  %p409_p1 = scmp.eq.s32.totalorder %s1159_s28, 0 }
  0x5a   : > { %s1401_s13 = sshll.u32 %s310_s5, 4  ;;  %767 = vmatprep.subr.mxu0 %v333_v0  ;;  %v331_v2 = vld [vmem:[#allocation7 + $0x68] sm:$0xff]  ;;  %v330_v3 = vld [vmem:[#allocation7 + $0x60] sm:$0xff]  ;;  %v329_v5 = vld [vmem:[#allocation7 + $0x58] sm:$0xff]  ;;  %p410_p3 = scmp.eq.s32.totalorder %s1155_s27, 0 }
  0x5b   : > { %768 = vmatpush3.msra.mxu0 %v333_v0  ;;  %v316_v4 = vld [vmem:[%s276_s14] sm:$0xff]  ;;  %v327_v7 = vld [vmem:[#allocation7 + $0x48] sm:$0xff]  ;;  %v325_v9 = vld [vmem:[#allocation7 + $0x38] sm:$0xff]  ;;  %s1416_s10 = scalar_lea.vmem [#allocation10], %s1401_s13 }
  0x5c   : > { %769 = vmatprep.subr.mxu0 %v332_v1  ;;  %799 = vmatprep.mubr.f32.mxu0 %v316_v4  ;;  %v328_v6 = vld [vmem:[#allocation7 + $0x50] sm:$0xff]  ;;  %v326_v8 = vld [vmem:[#allocation7 + $0x40] sm:$0xff]  ;;  %v323_v11 = vld [vmem:[#allocation7 + $0x28] sm:$0xff]  ;;  %p411_p7 = pnand %p410_p3, %p409_p1 }
  0x5d   : > { %770 = vmatpush3.msra.mxu0 %v332_v1  ;;  %v324_v10 = vld [vmem:[#allocation7 + $0x30] sm:$0xff]  ;;  %v322_v12 = vld [vmem:[#allocation7 + $0x20] sm:$0xff]  ;;  %v321_v13 = vld [vmem:[#allocation7 + $0x18] sm:$0xff] }
  0x5e   : > { %771 = vmatprep.subr.mxu0 %v331_v2  ;;  %v320_v14 = vld [vmem:[#allocation7 + $0x10] sm:$0xff]  ;;  %v319_v15 = vld [vmem:[#allocation7 + $0x8] sm:$0xff]  ;;  %v318_v16 = vld [vmem:[#allocation7] sm:$0xff] }
  0x5f   : > { %772 = vmatpush3.msra.mxu0 %v331_v2  ;;  %v317_v17 = vld [vmem:[%s276_s14 + $0x8] sm:$0xff] }
  0x60   : > { %773 = vmatprep.subr.mxu0 %v330_v3 }
  0x61   : > { %774 = vmatpush3.msra.mxu0 %v330_v3 }
  0x62   : > { %775 = vmatprep.subr.mxu0 %v329_v5 }
  0x63   : > { %776 = vmatpush3.msra.mxu0 %v329_v5 }
  0x64   : > { %777 = vmatprep.subr.mxu0 %v328_v6 }
  0x65   : > { %778 = vmatpush3.msra.mxu0 %v328_v6 }
  0x66   : > { %779 = vmatprep.subr.mxu0 %v327_v7 }
  0x67   : > { %780 = vmatpush3.msra.mxu0 %v327_v7 }
  0x68   : > { %781 = vmatprep.subr.mxu0 %v326_v8 }
  0x69   : > { %782 = vmatpush3.msra.mxu0 %v326_v8 }
  0x6a   : > { %783 = vmatprep.subr.mxu0 %v325_v9 }
  0x6b   : > { %784 = vmatpush3.msra.mxu0 %v325_v9 }
  0x6c   : > { %785 = vmatprep.subr.mxu0 %v324_v10 }
  0x6d   : > { %786 = vmatpush3.msra.mxu0 %v324_v10 }
  0x6e   : > { %787 = vmatprep.subr.mxu0 %v323_v11 }
  0x6f   : > { %788 = vmatpush3.msra.mxu0 %v323_v11 }
  0x70   : > { %789 = vmatprep.subr.mxu0 %v322_v12 }
  0x71   : > { %790 = vmatpush3.msra.mxu0 %v322_v12 }
  0x72   : > { %791 = vmatprep.subr.mxu0 %v321_v13 }
  0x73   : > { %792 = vmatpush3.msra.mxu0 %v321_v13 }
  0x74   : > { %793 = vmatprep.subr.mxu0 %v320_v14 }
  0x75   : > { %794 = vmatpush3.msra.mxu0 %v320_v14 }
  0x76   : > { %795 = vmatprep.subr.mxu0 %v319_v15 }
  0x77   : > { %796 = vmatpush3.msra.mxu0 %v319_v15 }
  0x78   : > { %797 = vmatprep.subr.mxu0 %v318_v16 }
  0x79   : > { %798 = vmatpush3.msra.mxu0 %v318_v16 }
  0x7a   : > { %800 = vmatmul.mubr.f32.vlgmr.msra.gmra.mxu0 %v317_v17 }
 0x138   : > { %414 = sbr.rel (%p411_p7) target bundleno = 319 (0x13f), region = 60 }
 0x13a   : > { %v1411_v18 = vpop.f32.mrf.mxu0 }
 0x13c   : > { %v1413_v19 = vpop.f32.mrf.mxu0 }
 0x13d   : > { %v1178_v20 = vmov 0.0  }
 0x13e   : > { %415 = vst [vmem:[#allocation2] sm:$0x1] %v1178_v20  ;;  %416 = vst [vmem:[#allocation3] sm:$0x1] %v1178_v20 }
 0x13f PF: > { %p719_p9 = scmp.ne.s32.totalorder %s1159_s28, 0 }
 0x141   : > { %419 = sbr.rel (%p719_p9) target bundleno = 345 (0x159), region = 64 }
 0x146   : > { %v421_v21 = vadd.f32 %v1411_v18, %v1413_v19  ;;  %v431_v22 = vmul.f32 %v1413_v19, %v1413_v19  ;;  %v432_v23 = vmul.f32 %v1411_v18, %v1411_v18  ;;  %v420_v34 = vld [vmem:[#allocation2] sm:$0x1]  ;;  %v430_v37 = vld [vmem:[#allocation3] sm:$0x1] }
 0x148   : > { %v422_v24 = vrot.slane %v421_v21, 4  ;;  %v433_v25 = vadd.f32 %v432_v23, %v431_v22 }
 0x14a   : > { %v423_v26 = vadd.f32 %v422_v24, %v421_v21  ;;  %v434_v27 = vrot.slane %v433_v25, 4 }
 0x14c   : > { %v424_v28 = vrot.slane %v423_v26, 2  ;;  %v435_v29 = vadd.f32 %v434_v27, %v433_v25 }
 0x14e   : > { %v425_v30 = vadd.f32 %v424_v28, %v423_v26  ;;  %v436_v31 = vrot.slane %v435_v29, 2 }
 0x150   : > { %v426_v32 = vrot.slane %v425_v30, 1  ;;  %v437_v33 = vadd.f32 %v436_v31, %v435_v29 }
 0x152   : > { %v427_v35 = vadd.f32 %v426_v32, %v425_v30  ;;  %v438_v36 = vrot.slane %v437_v33, 1 }
 0x154   : > { %v428_v38 = vadd.f32 %v427_v35, %v420_v34  ;;  %v439_v39 = vadd.f32 %v438_v36, %v437_v33 }
 0x156   : > { %429 = vst [vmem:[#allocation2] sm:$0x1] %v428_v38  ;;  %v440_v40 = vadd.f32 %v439_v39, %v430_v37 }
 0x158   : > { %441 = vst [vmem:[#allocation3] sm:$0x1] %v440_v40 }
 0x159 PF: > { %p442_p11 = scmp.eq.s32.totalorder %s1155_s27, 1 }
 0x15b   : > { %p443_p6 = pnand %p442_p11, %p409_p1 }
 0x15c   : > { %s1552_s1 = sld [smem:[#allocation20_spill]] (!%p443_p6) }
 0x15d   : > { %446 = sbr.rel (%p443_p6) target bundleno = 386 (0x182), region = 68 }
 0x162   : > { %v447_v41 = vld [vmem:[#allocation2] sm:$0x1]  ;;  %v449_v42 = vld [vmem:[#allocation3] sm:$0x1] }
 0x163   : > { %v448_v43 = vmul.f32 0.05, %v447_v41  ;;  %v450_v44 = vmul.f32 0.05, %v449_v42  ;;  %v456_v49 = vld [vmem:[%s1517_s3] sm:$0x1] }
 0x164   : > { %v459_v52 = vld [vmem:[%s1552_s1] sm:$0x1] }
 0x165   : > { %v451_v45 = vmul.f32 %v448_v43, %v448_v43 }
 0x167   : > { %v452_v46 = vsub.f32 %v450_v44, %v451_v45 }
 0x169   : > { %v453_v47 = vmax.f32 %v452_v46, 0.0 }
 0x16b   : > { %v454_v48 = vadd.f32 1e-05, %v453_v47 }
 0x16d   : > { %965 = vrsqrt.f32 %v454_v48 }
 0x17a   : > { %v966_v50 = vpop.eup %965 }
 0x17b   : > { %v457_v51 = vmul.f32 %v966_v50, %v456_v49 }
 0x17d   : > { %458 = vst [vmem:[#allocation2] sm:$0x1] %v457_v51  ;;  %v460_v53 = vmul.f32 %v457_v51, %v448_v43 }
 0x17f   : > { %v461_v54 = vsub.f32 %v459_v52, %v460_v53 }
 0x181   : > { %462 = vst [vmem:[#allocation3] sm:$0x1] %v461_v54 }
 0x182 PF: > { %p720_p8 = scmp.ne.s32.totalorder %s1159_s28, 1 }
 0x183   : > { %s1553_s4 = sld [smem:[#allocation21_spill]] (!%p720_p8) }
 0x184   : > { %466 = sbr.rel (%p720_p8) target bundleno = 624 (0x270), region = 72 }
 0x189   : > { %v502_v55 = vld [vmem:[#allocation9 + $0x78] sm:$0xff]  ;;  %v501_v56 = vld [vmem:[#allocation9 + $0x70] sm:$0xff]  ;;  %v500_v57 = vld [vmem:[#allocation9 + $0x68] sm:$0xff] }
 0x18a   : > { %802 = vmatprep.subr.mxu0 %v502_v55  ;;  %v499_v58 = vld [vmem:[#allocation9 + $0x60] sm:$0xff]  ;;  %v721_v59 = vld [vmem:[#allocation2] ss:$0 sm:$0xff]  ;;  %v722_v60 = vld [vmem:[#allocation3] ss:$0 sm:$0xff] }
 0x18b   : > { %803 = vmatpush3.msra.mxu0 %v502_v55  ;;  %v498_v61 = vld [vmem:[#allocation9 + $0x58] sm:$0xff]  ;;  %v474_v62 = vmul.f32 %v721_v59, %v1413_v19  ;;  %v497_v63 = vld [vmem:[#allocation9 + $0x50] sm:$0xff]  ;;  %v496_v1 = vld [vmem:[#allocation9 + $0x48] sm:$0xff]  ;;  %v475_v8 = vmul.f32 %v1411_v18, %v721_v59 }
 0x18c   : > { %804 = vmatprep.subr.mxu0 %v501_v56  ;;  %v495_v3 = vld [vmem:[#allocation9 + $0x40] sm:$0xff]  ;;  %v494_v4 = vld [vmem:[#allocation9 + $0x38] sm:$0xff]  ;;  %v493_v5 = vld [vmem:[#allocation9 + $0x30] sm:$0xff] }
 0x18d   : > { %805 = vmatpush3.msra.mxu0 %v501_v56  ;;  %v483_v0 = vadd.f32 %v722_v60, %v474_v62  ;;  %v492_v6 = vld [vmem:[#allocation9 + $0x28] sm:$0xff]  ;;  %v491_v7 = vld [vmem:[#allocation9 + $0x20] sm:$0xff]  ;;  %v490_v9 = vld [vmem:[#allocation9 + $0x18] sm:$0xff]  ;;  %v484_v11 = vadd.f32 %v722_v60, %v475_v8 }
 0x18e   : > { %806 = vmatprep.subr.mxu0 %v500_v57  ;;  %v489_v10 = vld [vmem:[#allocation9 + $0x10] sm:$0xff]  ;;  %v488_v12 = vld [vmem:[#allocation9 + $0x8] sm:$0xff]  ;;  %v487_v13 = vld [vmem:[#allocation9] sm:$0xff] }
 0x18f   : > { %807 = vmatpush3.msra.mxu0 %v500_v57  ;;  %v485_v2 = vmax.f32 %v483_v0, 0.0  ;;  %v486_v14 = vmax.f32 %v484_v11, 0.0  ;;  %v723_v15 = vld [vmem:[%s1553_s4] ss:$0 sm:$0xff] }
 0x190   : > { %808 = vmatprep.subr.mxu0 %v499_v58 }
 0x191   : > { %809 = vmatpush3.msra.mxu0 %v499_v58  ;;  %834 = vmatprep.mubr.f32.mxu0 %v485_v2 }
 0x192   : > { %810 = vmatprep.subr.mxu0 %v498_v61 }
 0x193   : > { %811 = vmatpush3.msra.mxu0 %v498_v61 }
 0x194   : > { %812 = vmatprep.subr.mxu0 %v497_v63 }
 0x195   : > { %813 = vmatpush3.msra.mxu0 %v497_v63 }
 0x196   : > { %814 = vmatprep.subr.mxu0 %v496_v1 }
 0x197   : > { %815 = vmatpush3.msra.mxu0 %v496_v1 }
 0x198   : > { %816 = vmatprep.subr.mxu0 %v495_v3 }
 0x199   : > { %817 = vmatpush3.msra.mxu0 %v495_v3 }
 0x19a   : > { %818 = vmatprep.subr.mxu0 %v494_v4 }
 0x19b   : > { %819 = vmatpush3.msra.mxu0 %v494_v4 }
 0x19c   : > { %820 = vmatprep.subr.mxu0 %v493_v5 }
 0x19d   : > { %821 = vmatpush3.msra.mxu0 %v493_v5 }
 0x19e   : > { %822 = vmatprep.subr.mxu0 %v492_v6 }
 0x19f   : > { %823 = vmatpush3.msra.mxu0 %v492_v6 }
 0x1a0   : > { %824 = vmatprep.subr.mxu0 %v491_v7 }
 0x1a1   : > { %825 = vmatpush3.msra.mxu0 %v491_v7 }
 0x1a2   : > { %826 = vmatprep.subr.mxu0 %v490_v9 }
 0x1a3   : > { %827 = vmatpush3.msra.mxu0 %v490_v9 }
 0x1a4   : > { %828 = vmatprep.subr.mxu0 %v489_v10 }
 0x1a5   : > { %829 = vmatpush3.msra.mxu0 %v489_v10 }
 0x1a6   : > { %830 = vmatprep.subr.mxu0 %v488_v12 }
 0x1a7   : > { %831 = vmatpush3.msra.mxu0 %v488_v12 }
 0x1a8   : > { %832 = vmatprep.subr.mxu0 %v487_v13 }
 0x1a9   : > { %833 = vmatpush3.msra.mxu0 %v487_v13 }
 0x1aa   : > { %835 = vmatmul.mubr.f32.vlgmr.msra.gmra.mxu0 %v486_v14 }
 0x26a   : > { %v836_v16 = vpop.f32.mrf.mxu0 }
 0x26b   : > { %v582_v17 = vadd.f32 %v836_v16, %v723_v15 }
 0x26c   : > { %v576_v18 = vpop.f32.mrf.mxu0 }
 0x26d   : > { %586 = vst [vmem:[%s1416_s10 + $0x8] sm:$0xff] %v582_v17  ;;  %v577_v19 = vadd.f32 %v723_v15, %v576_v18 }
 0x26f   : > { %585 = vst [vmem:[%s1416_s10] sm:$0xff] %v577_v19 }
 0x270 PF: > { %s1554_s21 = sld [smem:[#allocation16_spill]]  ;;  %s595_s9 = smul.u32 %s1155_s27, %s1159_s28 }
 0x271   : > { %s602_s8 = sshll.u32 %s1416_s10, 4  ;;  %s1555_s13 = sld [smem:[#allocation22_spill]]  ;;  %s1445_s8 = int_to_ptr.vmem [resolvable:$true] %s602_s8 }
 0x272   : > { %s730_s16 = sshll.u32 %s595_s9, 8  ;;  %s1454_s15 = scalar_lea.sflag [#allocation6], %s310_s5 }
 0x273   : > { %s1047_s18 = scalar_lea.vmem %s1445_s8, 256  ;;  %s1179_s27 = smov [#allocation10]  }
 0x274   : > { %p1048_p12 = scmp.ne.s32.totalorder %s1445_s8, %s1047_s18  ;;  %s1051_s28 = sshll.u32 %s1179_s27, 4  ;;  %s1052_s28 = int_to_ptr.vmem [resolvable:$false] %s1051_s28 }
 0x275   : > { %s1053_s10 = scalar_lea.vmem %s1052_s28, 512  ;;  %p1054_p13 = scmp.lt.s32.totalorder %s1445_s8, %s1052_s28 }
 0x276   : > { %p1556_p0 = scmp.ne.s32.totalorder %s1554_s21, 0  ;;  %p1055_p5 = scmp.lt.s32.totalorder %s1053_s10, %s1047_s18 }
 0x277   : > { %s1450_s12 = scalar_lea.hbm %s1555_s13, %s730_s16 }
 0x278   : > { %p1049_p2 = pnand %p1048_p12, %p1556_p0  ;;  %p1056_p10 = por %p1055_p5, %p1054_p13 }
 0x27a   : > { %p1050_p4 = pneg %p1049_p2 }
 0x27c   : > { %p1057_p1 = pnand %p1056_p10, %p1050_p4 }
 0x27e   : > { %1060 = shalt.err (!%p1057_p1)
}
 0x27f   : > { %s1061_s5 = scalar_lea.hbm %s1450_s12, 256  ;;  %s1065_s2 = scalar_lea.hbm %s1555_s13, 512 }
 0x280   : > { %p1062_p3 = scmp.ne.s32.totalorder %s1450_s12, %s1061_s5  ;;  %p1066_p11 = scmp.lt.s32.totalorder %s1450_s12, %s1555_s13 }
 0x281   : > { %p1067_p6 = scmp.lt.s32.totalorder %s1065_s2, %s1061_s5 }
 0x282   : > { %p1063_p7 = pnand %p1062_p3, %p1556_p0 }
 0x283   : > { %p1068_p8 = por %p1067_p6, %p1066_p11 }
 0x284   : > { %p1064_p9 = pneg %p1063_p7 }
 0x286   : > { %p1069_p12 = pnand %p1068_p8, %p1064_p9 }
 0x288   : > { %1072 = shalt.err (!%p1069_p12)
}
 0x289   : > { %s1180_s9 = smov 128   ;;  %s1181_s16 = smov 8  }
 0x28a   : > { %847 = dma.vmem_to_hbm [thread:$0]  (%p1556_p0), %s1445_s8, 256, %s1450_s12, %s1454_s15, %s1180_s9, %s1180_s9, %s1181_s16  }
 0x28b PF: > { %s1557_s24 = sld [smem:[#allocation14_spill]]  ;;  %p869_p2 = scmp.ge.s32.totalorder %s1171_s7, 2 }
 0x28c   : > { %s1558_s14 = sld [smem:[#allocation17_spill]] }
 0x291   : > { %s617_s18 = sand.u32 1, %s1557_s24  }
 0x292   : > { %p1559_p4 = scmp.ne.s32.totalorder %s1558_s14, 0  ;;  %s618_s27 = scalar_lea.sflag [#allocation6], %s617_s18 }
 0x294   : > { %p861_p13 = pnand %p869_p2, %p1559_p4 }
 0x296   : > { %p862_p5 = pneg %p861_p13 }
 0x298   : > { %1126 = dma.done.wait (%p862_p5), %s618_s27, 256  }
 0x299   : > { %1128 = vsyncadd (%p862_p5), %s618_s27, 4294967040  ;;  %s23_s7 = sadd.s32 1, %s1171_s7   ;;  %s1560_s28 = sld [smem:[#allocation15_spill]] }
 0x29a   : > { %p20_p10 = scmp.ge.s32.totalorder %s23_s7, 6   ;;  %s1561_s21 = smov %s1135_s22 }
 0x29b   : > { %s1562_s22 = smov %s1139_s23  ;;  %s1563_s23 = smov %s1367_s30 }
 0x29c   : > { %s1564_s24 = smov %s1147_s25  ;;  %s1565_s25 = smov %s1151_s26 }
 0x29d   : > { %s1566_s26 = smov %s1355_s19  ;;  %s1567_s27 = smov %s1163_s29 }
 0x29e   : > { %s1568_s29 = smov %s1571_s11  ;;  %s1569_s30 = smov %s1575_s17 }
 0x29f   :  { %22 = sbr.rel (!%p20_p10) target bundleno = 16 (0x10), region = 113 }
 0x2a4   :  { %623 = vsyncpa [#allocation5], 1 }
 0x2a5   :  { %625 = vsyncpa [#allocation5 + $0x1], 1 }
 0x2a6   :  { %626 = vsyncpa [#allocation8], 1 }
 0x2a7   :  { %627 = vsyncpa [#allocation6], 1 }
 0x2a8   :  { %629 = vsyncpa [#allocation6 + $0x1], 1 }

</bundles_post_ra>
